<compile_context>
chip_gen: v7x
topology: tpu7x:2x2x1
jax: 0.10.0
libtpu: 0.0.40
codegen_flags: <defaults>
</compile_context>

<pallas_src>
import functools

import jax
import jax.numpy as jnp
from jax.experimental import pallas as pl
from jax.experimental.pallas import tpu as pltpu  # noqa: F401  (TPU backend)


# ----------------------------------------------------------------------------
# Kernel: whole rollout in one invocation.
# ----------------------------------------------------------------------------
def _rssm_kernel(T, B,
                 sa_ref, h0_ref,
                 w_enc_ref, b_enc_ref,
                 w_x_ref, b_ih_ref,
                 w_h_ref, b_hh_ref,
                 w_dec_ref, b_dec_ref,
                 pred_ref, hid_ref):
    H = h0_ref.shape[-1]

    # ---- hoisted, time-independent matmuls batched over all T*B rows ----
    x = jnp.maximum(
        jnp.dot(sa_ref[...], w_enc_ref[...], preferred_element_type=jnp.float32)
        + b_enc_ref[...],
        0.0,
    )                                                             # (T*B, H)
    gx = (jnp.dot(x, w_x_ref[...], preferred_element_type=jnp.float32)
          + b_ih_ref[...])                                        # (T*B, 3H) [r|z|n]

    # ---- serial recurrence: h carried in vregs, one fused matmul per step ----
    h = h0_ref[...]                                               # (B, H)
    for t in range(T):                     # T is small & static -> full unroll
        gx_t = gx[t * B:(t + 1) * B, :]                           # (B, 3H)
        gh = (jnp.dot(h, w_h_ref[...], preferred_element_type=jnp.float32)
              + b_hh_ref[...])                                    # (B, 3H)
        r = jax.nn.sigmoid(gx_t[:, 0:H] + gh[:, 0:H])
        z = jax.nn.sigmoid(gx_t[:, H:2 * H] + gh[:, H:2 * H])
        n = jnp.tanh(gx_t[:, 2 * H:3 * H] + r * gh[:, 2 * H:3 * H])
        h = (1.0 - z) * n + z * h
        hid_ref[t * B:(t + 1) * B, :] = h         # output store, off crit. path

    # ---- hoisted decoder over all steps (one batched matmul) ----
    h_all = hid_ref[...]                                          # (T*B, H)
    pred_ref[...] = (jnp.dot(h_all, w_dec_ref[...],
                             preferred_element_type=jnp.float32)
                     + b_dec_ref[...])                            # (T*B, S)


# ----------------------------------------------------------------------------
# Wrappers
# ----------------------------------------------------------------------------
def rssm_rollout(states, actions, hidden, kparams):
    """Multi-step RSSM rollout in ONE pallas_call (no grid).

    states : (T, B, state_dim) f32
    actions: (T, B, action_dim) f32 or None
    hidden : (B, rnn_hidden_dim) f32
    returns (preds (T, B, state_dim), hiddens (T, B, rnn_hidden_dim))
    """
    T, B, S = states.shape
    H = hidden.shape[-1]
    A = kparams["w_enc"].shape[0] - S
    if actions is None:
        actions = jnp.zeros((T, B, A), dtype=states.dtype)

    # pre-concatenate + flatten so the kernel runs batched (T*B, .) matmuls
    sa = jnp.concatenate([states, actions], axis=-1).reshape(T * B, S + A)

    args = [
        sa, hidden,
        kparams["w_enc"], kparams["b_enc"],
        kparams["w_x"], kparams["b_ih"],
        kparams["w_h"], kparams["b_hh"],
        kparams["w_dec"], kparams["b_dec"],
    ]

    flops = (2 * T * B * (S + A) * H        # encoder
             + 2 * T * B * H * 3 * H        # hoisted x-side gates
             + 2 * T * B * H * 3 * H        # per-step hidden-side gates
             + 2 * T * B * H * S)           # decoder
    bytes_accessed = sum(int(a.size) * 4 for a in args) + T * B * (S + H) * 4
    cost = pl.CostEstimate(flops=int(flops),
                           transcendentals=int(3 * T * B * H),
                           bytes_accessed=int(bytes_accessed))

    preds_flat, hid_flat = pl.pallas_call(
        functools.partial(_rssm_kernel, T, B),
        out_shape=(jax.ShapeDtypeStruct((T * B, S), jnp.float32),
                   jax.ShapeDtypeStruct((T * B, H), jnp.float32)),
        cost_estimate=cost,
    )(*args)

    return preds_flat.reshape(T, B, S), hid_flat.reshape(T, B, H)


def rssm_forward(state, action, hidden, kparams):
    """Single-step forward, identical semantics to the PyTorch module."""
    B, S = state.shape
    A = kparams["w_enc"].shape[0] - S
    if action is None:
        action = jnp.zeros((B, A), dtype=state.dtype)
    preds, hiddens = rssm_rollout(state[None], action[None], hidden, kparams)
    return preds[0], hiddens[0]


# ----------------------------------------------------------------------------
# Parameters (PyTorch layout) + conversion to kernel layout
# ----------------------------------------------------------------------------
def init_params(key, state_dim, action_dim, hidden_dim):
    """Deterministic synthetic parameters with PyTorch shapes/init ranges."""
    ks = jax.random.split(key, 8)

    def u(k, shape, fan_in):
        bound = 1.0 / jnp.sqrt(jnp.float32(fan_in))
        return jax.random.uniform(k, shape, jnp.float32, -bound, bound)

    enc_in = state_dim + action_dim
    return {
        "w_enc": u(ks[0], (hidden_dim, enc_in), enc_in),             # (H, S+A)
        "b_enc": u(ks[1], (hidden_dim,), enc_in),
        "w_ih": u(ks[2], (3 * hidden_dim, hidden_dim), hidden_dim),  # rows [r|z|n]
        "b_ih": u(ks[3], (3 * hidden_dim,), hidden_dim),
        "w_hh": u(ks[4], (3 * hidden_dim, hidden_dim), hidden_dim),
        "b_hh": u(ks[5], (3 * hidden_dim,), hidden_dim),
        "w_dec": u(ks[6], (state_dim, hidden_dim), hidden_dim),      # (S, H)
        "b_dec": u(ks[7], (state_dim,), hidden_dim),
    }


def prepare_params(tp):
    """PyTorch layout -> kernel layout (transposed, gates fused along lanes)."""
    return {
        "w_enc": tp["w_enc"].T,                 # (S+A, H)
        "b_enc": tp["b_enc"].reshape(1, -1),    # (1, H)
        "w_x": tp["w_ih"].T,                    # (H, 3H) columns [r|z|n]
        "b_ih": tp["b_ih"].reshape(1, -1),      # (1, 3H)
        "w_h": tp["w_hh"].T,                    # (H, 3H)
        "b_hh": tp["b_hh"].reshape(1, -1),      # (1, 3H)
        "w_dec": tp["w_dec"].T,                 # (H, S)
        "b_dec": tp["b_dec"].reshape(1, -1),    # (1, S)
    }


# ----------------------------------------------------------------------------
# Pure-JAX reference of the PyTorch forward (torch-layout params)
# ----------------------------------------------------------------------------
def rssm_reference_step(state, action, hidden, tp):
    if action is None:
        a_dim = tp["w_enc"].shape[1] - state.shape[-1]
        action = jnp.zeros((state.shape[0], a_dim), dtype=state.dtype)
    x = jnp.concatenate([state, action], axis=-1)
    x = jax.nn.relu(x @ tp["w_enc"].T + tp["b_enc"])
    gi = x @ tp["w_ih"].T + tp["b_ih"]
    gh = hidden @ tp["w_hh"].T + tp["b_hh"]
    H = hidden.shape[-1]
    r = jax.nn.sigmoid(gi[:, :H] + gh[:, :H])
    z = jax.nn.sigmoid(gi[:, H:2 * H] + gh[:, H:2 * H])
    n = jnp.tanh(gi[:, 2 * H:] + r * gh[:, 2 * H:])
    h_new = (1.0 - z) * n + z * hidden
    pred = h_new @ tp["w_dec"].T + tp["b_dec"]
    return pred, h_new


if __name__ == "__main__":
    batch, state_dim, action_dim, rnn_hidden_dim, seq = 2, 8, 4, 32, 8

    key = jax.random.PRNGKey(0)
    k_s, k_a, k_h, k_p = jax.random.split(key, 4)

    states = jax.random.normal(k_s, (seq, batch, state_dim), jnp.float32)
    actions = jax.random.normal(k_a, (seq, batch, action_dim), jnp.float32)
    hidden0 = jax.random.normal(k_h, (batch, rnn_hidden_dim), jnp.float32)

    tparams = init_params(k_p, state_dim, action_dim, rnn_hidden_dim)
    kparams = prepare_params(tparams)

    # ---- multi-step rollout: one pallas_call, everything resident in VMEM ----
    preds, hiddens = rssm_rollout(states, actions, hidden0, kparams)
    jax.block_until_ready((preds, hiddens))

    h = hidden0
    ref_preds, ref_hiddens = [], []
    for t in range(seq):
        p, h = rssm_reference_step(states[t], actions[t], h, tparams)
        ref_preds.append(p)
        ref_hiddens.append(h)
    ref_preds = jnp.stack(ref_preds)
    ref_hiddens = jnp.stack(ref_hiddens)
    assert jnp.allclose(preds, ref_preds, atol=1e-4, rtol=1e-4)
    assert jnp.allclose(hiddens, ref_hiddens, atol=1e-4, rtol=1e-4)

    # ---- single-step forward (original module semantics) ----
    sp, hn = rssm_forward(states[0], actions[0], hidden0, kparams)
    jax.block_until_ready((sp, hn))
    rp, rh = rssm_reference_step(states[0], actions[0], hidden0, tparams)
    assert jnp.allclose(sp, rp, atol=1e-5, rtol=1e-5)
    assert jnp.allclose(hn, rh, atol=1e-5, rtol=1e-5)

    # ---- action-is-None branch ----
    sp2, hn2 = rssm_forward(states[0], None, hidden0, kparams)
    jax.block_until_ready((sp2, hn2))
    rp2, rh2 = rssm_reference_step(states[0], None, hidden0, tparams)
    assert jnp.allclose(sp2, rp2, atol=1e-5, rtol=1e-5)
    assert jnp.allclose(hn2, rh2, atol=1e-5, rtol=1e-5)

    print("KERNEL_OK")
</pallas_src>

<mosaic_0001>
module attributes {stable_mosaic.version = 11 : i64} {
  func.func @_rssm_kernel(%arg0: memref<16x12xf32, #tpu.memory_space<vmem>>, %arg1: memref<2x32xf32, #tpu.memory_space<vmem>>, %arg2: memref<12x32xf32, #tpu.memory_space<vmem>>, %arg3: memref<1x32xf32, #tpu.memory_space<vmem>>, %arg4: memref<32x96xf32, #tpu.memory_space<vmem>>, %arg5: memref<1x96xf32, #tpu.memory_space<vmem>>, %arg6: memref<32x96xf32, #tpu.memory_space<vmem>>, %arg7: memref<1x96xf32, #tpu.memory_space<vmem>>, %arg8: memref<32x8xf32, #tpu.memory_space<vmem>>, %arg9: memref<1x8xf32, #tpu.memory_space<vmem>>, %arg10: memref<16x8xf32, #tpu.memory_space<vmem>>, %arg11: memref<16x32xf32, #tpu.memory_space<vmem>>) attributes {dimension_semantics = [], scalar_prefetch = 0 : i64, scratch_operands = 0 : i64, tpu.core_type = #tpu.core_type<tc>} {
    %c0 = arith.constant 0 : index
    %c0_0 = arith.constant 0 : index
    %0 = vector.load %arg0[%c0, %c0_0] : memref<16x12xf32, #tpu.memory_space<vmem>>, vector<16x12xf32>
    %c0_1 = arith.constant 0 : index
    %c0_2 = arith.constant 0 : index
    %1 = vector.load %arg2[%c0_1, %c0_2] : memref<12x32xf32, #tpu.memory_space<vmem>>, vector<12x32xf32>
    %cst = arith.constant dense<0.000000e+00> : vector<16x32xf32>
    %2 = tpu.matmul %0, %1, %cst {dimension_numbers = #tpu.dot_dimension_numbers<[1], [0], [0], [1], [0, 0, 1, 1], [], []>} : vector<16x12xf32>, vector<12x32xf32>, vector<16x32xf32> -> vector<16x32xf32>
    %c0_3 = arith.constant 0 : index
    %c0_4 = arith.constant 0 : index
    %3 = vector.load %arg3[%c0_3, %c0_4] : memref<1x32xf32, #tpu.memory_space<vmem>>, vector<1x32xf32>
    %4 = vector.broadcast %3 : vector<1x32xf32> to vector<16x32xf32>
    %5 = arith.addf %2, %4 : vector<16x32xf32>
    %cst_5 = arith.constant 0.000000e+00 : f32
    %6 = vector.broadcast %cst_5 : f32 to vector<16x32xf32>
    %7 = arith.maximumf %5, %6 : vector<16x32xf32>
    %c0_6 = arith.constant 0 : index
    %c0_7 = arith.constant 0 : index
    %8 = vector.load %arg4[%c0_6, %c0_7] : memref<32x96xf32, #tpu.memory_space<vmem>>, vector<32x96xf32>
    %cst_8 = arith.constant dense<0.000000e+00> : vector<16x96xf32>
    %9 = tpu.matmul %7, %8, %cst_8 {dimension_numbers = #tpu.dot_dimension_numbers<[1], [0], [0], [1], [0, 0, 1, 1], [], []>} : vector<16x32xf32>, vector<32x96xf32>, vector<16x96xf32> -> vector<16x96xf32>
    %c0_9 = arith.constant 0 : index
    %c0_10 = arith.constant 0 : index
    %10 = vector.load %arg5[%c0_9, %c0_10] : memref<1x96xf32, #tpu.memory_space<vmem>>, vector<1x96xf32>
    %11 = vector.broadcast %10 : vector<1x96xf32> to vector<16x96xf32>
    %12 = arith.addf %9, %11 : vector<16x96xf32>
    %c0_11 = arith.constant 0 : index
    %c0_12 = arith.constant 0 : index
    %13 = vector.load %arg1[%c0_11, %c0_12] : memref<2x32xf32, #tpu.memory_space<vmem>>, vector<2x32xf32>
    %14 = vector.extract_strided_slice %12 {offsets = [0, 0], sizes = [2, 96], strides = [1, 1]} : vector<16x96xf32> to vector<2x96xf32>
    %c0_13 = arith.constant 0 : index
    %c0_14 = arith.constant 0 : index
    %15 = vector.load %arg6[%c0_13, %c0_14] : memref<32x96xf32, #tpu.memory_space<vmem>>, vector<32x96xf32>
    %cst_15 = arith.constant dense<0.000000e+00> : vector<2x96xf32>
    %16 = tpu.matmul %13, %15, %cst_15 {dimension_numbers = #tpu.dot_dimension_numbers<[1], [0], [0], [1], [0, 0, 1, 1], [], []>} : vector<2x32xf32>, vector<32x96xf32>, vector<2x96xf32> -> vector<2x96xf32>
    %c0_16 = arith.constant 0 : index
    %c0_17 = arith.constant 0 : index
    %17 = vector.load %arg7[%c0_16, %c0_17] : memref<1x96xf32, #tpu.memory_space<vmem>>, vector<1x96xf32>
    %18 = vector.broadcast %17 : vector<1x96xf32> to vector<2x96xf32>
    %19 = arith.addf %16, %18 : vector<2x96xf32>
    %20 = vector.extract_strided_slice %14 {offsets = [0, 0], sizes = [2, 32], strides = [1, 1]} : vector<2x96xf32> to vector<2x32xf32>
    %21 = vector.extract_strided_slice %19 {offsets = [0, 0], sizes = [2, 32], strides = [1, 1]} : vector<2x96xf32> to vector<2x32xf32>
    %22 = arith.addf %20, %21 : vector<2x32xf32>
    %23 = arith.negf %22 : vector<2x32xf32>
    %24 = math.exp %23 : vector<2x32xf32>
    %cst_18 = arith.constant 1.000000e+00 : f32
    %25 = vector.broadcast %cst_18 : f32 to vector<2x32xf32>
    %26 = arith.addf %25, %24 : vector<2x32xf32>
    %27 = arith.divf %25, %26 : vector<2x32xf32>
    %28 = vector.extract_strided_slice %14 {offsets = [0, 32], sizes = [2, 32], strides = [1, 1]} : vector<2x96xf32> to vector<2x32xf32>
    %29 = vector.extract_strided_slice %19 {offsets = [0, 32], sizes = [2, 32], strides = [1, 1]} : vector<2x96xf32> to vector<2x32xf32>
    %30 = arith.addf %28, %29 : vector<2x32xf32>
    %31 = arith.negf %30 : vector<2x32xf32>
    %32 = math.exp %31 : vector<2x32xf32>
    %cst_19 = arith.constant 1.000000e+00 : f32
    %33 = vector.broadcast %cst_19 : f32 to vector<2x32xf32>
    %34 = arith.addf %33, %32 : vector<2x32xf32>
    %35 = arith.divf %33, %34 : vector<2x32xf32>
    %36 = vector.extract_strided_slice %14 {offsets = [0, 64], sizes = [2, 32], strides = [1, 1]} : vector<2x96xf32> to vector<2x32xf32>
    %37 = vector.extract_strided_slice %19 {offsets = [0, 64], sizes = [2, 32], strides = [1, 1]} : vector<2x96xf32> to vector<2x32xf32>
    %38 = arith.mulf %27, %37 : vector<2x32xf32>
    %39 = arith.addf %36, %38 : vector<2x32xf32>
    %40 = math.tanh %39 : vector<2x32xf32>
    %cst_20 = arith.constant 1.000000e+00 : f32
    %41 = vector.broadcast %cst_20 : f32 to vector<2x32xf32>
    %42 = arith.subf %41, %35 : vector<2x32xf32>
    %43 = arith.mulf %42, %40 : vector<2x32xf32>
    %44 = arith.mulf %35, %13 : vector<2x32xf32>
    %45 = arith.addf %43, %44 : vector<2x32xf32>
    %c0_21 = arith.constant 0 : index
    %c0_22 = arith.constant 0 : index
    %46 = vector.load %arg11[%c0_21, %c0_22] : memref<16x32xf32, #tpu.memory_space<vmem>>, vector<2x32xf32>
    tpu.vector_store %arg11[%c0_21, %c0_22], %45 {strides = array<i32>} : memref<16x32xf32, #tpu.memory_space<vmem>>, vector<2x32xf32>,
    %47 = vector.extract_strided_slice %12 {offsets = [2, 0], sizes = [2, 96], strides = [1, 1]} : vector<16x96xf32> to vector<2x96xf32>
    %c0_23 = arith.constant 0 : index
    %c0_24 = arith.constant 0 : index
    %48 = vector.load %arg6[%c0_23, %c0_24] : memref<32x96xf32, #tpu.memory_space<vmem>>, vector<32x96xf32>
    %cst_25 = arith.constant dense<0.000000e+00> : vector<2x96xf32>
    %49 = tpu.matmul %45, %48, %cst_25 {dimension_numbers = #tpu.dot_dimension_numbers<[1], [0], [0], [1], [0, 0, 1, 1], [], []>} : vector<2x32xf32>, vector<32x96xf32>, vector<2x96xf32> -> vector<2x96xf32>
    %c0_26 = arith.constant 0 : index
    %c0_27 = arith.constant 0 : index
    %50 = vector.load %arg7[%c0_26, %c0_27] : memref<1x96xf32, #tpu.memory_space<vmem>>, vector<1x96xf32>
    %51 = vector.broadcast %50 : vector<1x96xf32> to vector<2x96xf32>
    %52 = arith.addf %49, %51 : vector<2x96xf32>
    %53 = vector.extract_strided_slice %47 {offsets = [0, 0], sizes = [2, 32], strides = [1, 1]} : vector<2x96xf32> to vector<2x32xf32>
    %54 = vector.extract_strided_slice %52 {offsets = [0, 0], sizes = [2, 32], strides = [1, 1]} : vector<2x96xf32> to vector<2x32xf32>
    %55 = arith.addf %53, %54 : vector<2x32xf32>
    %56 = arith.negf %55 : vector<2x32xf32>
    %57 = math.exp %56 : vector<2x32xf32>
    %cst_28 = arith.constant 1.000000e+00 : f32
    %58 = vector.broadcast %cst_28 : f32 to vector<2x32xf32>
    %59 = arith.addf %58, %57 : vector<2x32xf32>
    %60 = arith.divf %58, %59 : vector<2x32xf32>
    %61 = vector.extract_strided_slice %47 {offsets = [0, 32], sizes = [2, 32], strides = [1, 1]} : vector<2x96xf32> to vector<2x32xf32>
    %62 = vector.extract_strided_slice %52 {offsets = [0, 32], sizes = [2, 32], strides = [1, 1]} : vector<2x96xf32> to vector<2x32xf32>
    %63 = arith.addf %61, %62 : vector<2x32xf32>
    %64 = arith.negf %63 : vector<2x32xf32>
    %65 = math.exp %64 : vector<2x32xf32>
    %cst_29 = arith.constant 1.000000e+00 : f32
    %66 = vector.broadcast %cst_29 : f32 to vector<2x32xf32>
    %67 = arith.addf %66, %65 : vector<2x32xf32>
    %68 = arith.divf %66, %67 : vector<2x32xf32>
    %69 = vector.extract_strided_slice %47 {offsets = [0, 64], sizes = [2, 32], strides = [1, 1]} : vector<2x96xf32> to vector<2x32xf32>
    %70 = vector.extract_strided_slice %52 {offsets = [0, 64], sizes = [2, 32], strides = [1, 1]} : vector<2x96xf32> to vector<2x32xf32>
    %71 = arith.mulf %60, %70 : vector<2x32xf32>
    %72 = arith.addf %69, %71 : vector<2x32xf32>
    %73 = math.tanh %72 : vector<2x32xf32>
    %cst_30 = arith.constant 1.000000e+00 : f32
    %74 = vector.broadcast %cst_30 : f32 to vector<2x32xf32>
    %75 = arith.subf %74, %68 : vector<2x32xf32>
    %76 = arith.mulf %75, %73 : vector<2x32xf32>
    %77 = arith.mulf %68, %45 : vector<2x32xf32>
    %78 = arith.addf %76, %77 : vector<2x32xf32>
    %c2 = arith.constant 2 : index
    %c0_31 = arith.constant 0 : index
    %79 = vector.load %arg11[%c2, %c0_31] : memref<16x32xf32, #tpu.memory_space<vmem>>, vector<2x32xf32>
    tpu.vector_store %arg11[%c2, %c0_31], %78 {strides = array<i32>} : memref<16x32xf32, #tpu.memory_space<vmem>>, vector<2x32xf32>,
    %80 = vector.extract_strided_slice %12 {offsets = [4, 0], sizes = [2, 96], strides = [1, 1]} : vector<16x96xf32> to vector<2x96xf32>
    %c0_32 = arith.constant 0 : index
    %c0_33 = arith.constant 0 : index
    %81 = vector.load %arg6[%c0_32, %c0_33] : memref<32x96xf32, #tpu.memory_space<vmem>>, vector<32x96xf32>
    %cst_34 = arith.constant dense<0.000000e+00> : vector<2x96xf32>
    %82 = tpu.matmul %78, %81, %cst_34 {dimension_numbers = #tpu.dot_dimension_numbers<[1], [0], [0], [1], [0, 0, 1, 1], [], []>} : vector<2x32xf32>, vector<32x96xf32>, vector<2x96xf32> -> vector<2x96xf32>
    %c0_35 = arith.constant 0 : index
    %c0_36 = arith.constant 0 : index
    %83 = vector.load %arg7[%c0_35, %c0_36] : memref<1x96xf32, #tpu.memory_space<vmem>>, vector<1x96xf32>
    %84 = vector.broadcast %83 : vector<1x96xf32> to vector<2x96xf32>
    %85 = arith.addf %82, %84 : vector<2x96xf32>
    %86 = vector.extract_strided_slice %80 {offsets = [0, 0], sizes = [2, 32], strides = [1, 1]} : vector<2x96xf32> to vector<2x32xf32>
    %87 = vector.extract_strided_slice %85 {offsets = [0, 0], sizes = [2, 32], strides = [1, 1]} : vector<2x96xf32> to vector<2x32xf32>
    %88 = arith.addf %86, %87 : vector<2x32xf32>
    %89 = arith.negf %88 : vector<2x32xf32>
    %90 = math.exp %89 : vector<2x32xf32>
    %cst_37 = arith.constant 1.000000e+00 : f32
    %91 = vector.broadcast %cst_37 : f32 to vector<2x32xf32>
    %92 = arith.addf %91, %90 : vector<2x32xf32>
    %93 = arith.divf %91, %92 : vector<2x32xf32>
    %94 = vector.extract_strided_slice %80 {offsets = [0, 32], sizes = [2, 32], strides = [1, 1]} : vector<2x96xf32> to vector<2x32xf32>
    %95 = vector.extract_strided_slice %85 {offsets = [0, 32], sizes = [2, 32], strides = [1, 1]} : vector<2x96xf32> to vector<2x32xf32>
    %96 = arith.addf %94, %95 : vector<2x32xf32>
    %97 = arith.negf %96 : vector<2x32xf32>
    %98 = math.exp %97 : vector<2x32xf32>
    %cst_38 = arith.constant 1.000000e+00 : f32
    %99 = vector.broadcast %cst_38 : f32 to vector<2x32xf32>
    %100 = arith.addf %99, %98 : vector<2x32xf32>
    %101 = arith.divf %99, %100 : vector<2x32xf32>
    %102 = vector.extract_strided_slice %80 {offsets = [0, 64], sizes = [2, 32], strides = [1, 1]} : vector<2x96xf32> to vector<2x32xf32>
    %103 = vector.extract_strided_slice %85 {offsets = [0, 64], sizes = [2, 32], strides = [1, 1]} : vector<2x96xf32> to vector<2x32xf32>
    %104 = arith.mulf %93, %103 : vector<2x32xf32>
    %105 = arith.addf %102, %104 : vector<2x32xf32>
    %106 = math.tanh %105 : vector<2x32xf32>
    %cst_39 = arith.constant 1.000000e+00 : f32
    %107 = vector.broadcast %cst_39 : f32 to vector<2x32xf32>
    %108 = arith.subf %107, %101 : vector<2x32xf32>
    %109 = arith.mulf %108, %106 : vector<2x32xf32>
    %110 = arith.mulf %101, %78 : vector<2x32xf32>
    %111 = arith.addf %109, %110 : vector<2x32xf32>
    %c4 = arith.constant 4 : index
    %c0_40 = arith.constant 0 : index
    %112 = vector.load %arg11[%c4, %c0_40] : memref<16x32xf32, #tpu.memory_space<vmem>>, vector<2x32xf32>
    tpu.vector_store %arg11[%c4, %c0_40], %111 {strides = array<i32>} : memref<16x32xf32, #tpu.memory_space<vmem>>, vector<2x32xf32>,
    %113 = vector.extract_strided_slice %12 {offsets = [6, 0], sizes = [2, 96], strides = [1, 1]} : vector<16x96xf32> to vector<2x96xf32>
    %c0_41 = arith.constant 0 : index
    %c0_42 = arith.constant 0 : index
    %114 = vector.load %arg6[%c0_41, %c0_42] : memref<32x96xf32, #tpu.memory_space<vmem>>, vector<32x96xf32>
    %cst_43 = arith.constant dense<0.000000e+00> : vector<2x96xf32>
    %115 = tpu.matmul %111, %114, %cst_43 {dimension_numbers = #tpu.dot_dimension_numbers<[1], [0], [0], [1], [0, 0, 1, 1], [], []>} : vector<2x32xf32>, vector<32x96xf32>, vector<2x96xf32> -> vector<2x96xf32>
    %c0_44 = arith.constant 0 : index
    %c0_45 = arith.constant 0 : index
    %116 = vector.load %arg7[%c0_44, %c0_45] : memref<1x96xf32, #tpu.memory_space<vmem>>, vector<1x96xf32>
    %117 = vector.broadcast %116 : vector<1x96xf32> to vector<2x96xf32>
    %118 = arith.addf %115, %117 : vector<2x96xf32>
    %119 = vector.extract_strided_slice %113 {offsets = [0, 0], sizes = [2, 32], strides = [1, 1]} : vector<2x96xf32> to vector<2x32xf32>
    %120 = vector.extract_strided_slice %118 {offsets = [0, 0], sizes = [2, 32], strides = [1, 1]} : vector<2x96xf32> to vector<2x32xf32>
    %121 = arith.addf %119, %120 : vector<2x32xf32>
    %122 = arith.negf %121 : vector<2x32xf32>
    %123 = math.exp %122 : vector<2x32xf32>
    %cst_46 = arith.constant 1.000000e+00 : f32
    %124 = vector.broadcast %cst_46 : f32 to vector<2x32xf32>
    %125 = arith.addf %124, %123 : vector<2x32xf32>
    %126 = arith.divf %124, %125 : vector<2x32xf32>
    %127 = vector.extract_strided_slice %113 {offsets = [0, 32], sizes = [2, 32], strides = [1, 1]} : vector<2x96xf32> to vector<2x32xf32>
    %128 = vector.extract_strided_slice %118 {offsets = [0, 32], sizes = [2, 32], strides = [1, 1]} : vector<2x96xf32> to vector<2x32xf32>
    %129 = arith.addf %127, %128 : vector<2x32xf32>
    %130 = arith.negf %129 : vector<2x32xf32>
    %131 = math.exp %130 : vector<2x32xf32>
    %cst_47 = arith.constant 1.000000e+00 : f32
    %132 = vector.broadcast %cst_47 : f32 to vector<2x32xf32>
    %133 = arith.addf %132, %131 : vector<2x32xf32>
    %134 = arith.divf %132, %133 : vector<2x32xf32>
    %135 = vector.extract_strided_slice %113 {offsets = [0, 64], sizes = [2, 32], strides = [1, 1]} : vector<2x96xf32> to vector<2x32xf32>
    %136 = vector.extract_strided_slice %118 {offsets = [0, 64], sizes = [2, 32], strides = [1, 1]} : vector<2x96xf32> to vector<2x32xf32>
    %137 = arith.mulf %126, %136 : vector<2x32xf32>
    %138 = arith.addf %135, %137 : vector<2x32xf32>
    %139 = math.tanh %138 : vector<2x32xf32>
    %cst_48 = arith.constant 1.000000e+00 : f32
    %140 = vector.broadcast %cst_48 : f32 to vector<2x32xf32>
    %141 = arith.subf %140, %134 : vector<2x32xf32>
    %142 = arith.mulf %141, %139 : vector<2x32xf32>
    %143 = arith.mulf %134, %111 : vector<2x32xf32>
    %144 = arith.addf %142, %143 : vector<2x32xf32>
    %c6 = arith.constant 6 : index
    %c0_49 = arith.constant 0 : index
    %145 = vector.load %arg11[%c6, %c0_49] : memref<16x32xf32, #tpu.memory_space<vmem>>, vector<2x32xf32>
    tpu.vector_store %arg11[%c6, %c0_49], %144 {strides = array<i32>} : memref<16x32xf32, #tpu.memory_space<vmem>>, vector<2x32xf32>,
    %146 = vector.extract_strided_slice %12 {offsets = [8, 0], sizes = [2, 96], strides = [1, 1]} : vector<16x96xf32> to vector<2x96xf32>
    %c0_50 = arith.constant 0 : index
    %c0_51 = arith.constant 0 : index
    %147 = vector.load %arg6[%c0_50, %c0_51] : memref<32x96xf32, #tpu.memory_space<vmem>>, vector<32x96xf32>
    %cst_52 = arith.constant dense<0.000000e+00> : vector<2x96xf32>
    %148 = tpu.matmul %144, %147, %cst_52 {dimension_numbers = #tpu.dot_dimension_numbers<[1], [0], [0], [1], [0, 0, 1, 1], [], []>} : vector<2x32xf32>, vector<32x96xf32>, vector<2x96xf32> -> vector<2x96xf32>
    %c0_53 = arith.constant 0 : index
    %c0_54 = arith.constant 0 : index
    %149 = vector.load %arg7[%c0_53, %c0_54] : memref<1x96xf32, #tpu.memory_space<vmem>>, vector<1x96xf32>
    %150 = vector.broadcast %149 : vector<1x96xf32> to vector<2x96xf32>
    %151 = arith.addf %148, %150 : vector<2x96xf32>
    %152 = vector.extract_strided_slice %146 {offsets = [0, 0], sizes = [2, 32], strides = [1, 1]} : vector<2x96xf32> to vector<2x32xf32>
    %153 = vector.extract_strided_slice %151 {offsets = [0, 0], sizes = [2, 32], strides = [1, 1]} : vector<2x96xf32> to vector<2x32xf32>
    %154 = arith.addf %152, %153 : vector<2x32xf32>
    %155 = arith.negf %154 : vector<2x32xf32>
    %156 = math.exp %155 : vector<2x32xf32>
    %cst_55 = arith.constant 1.000000e+00 : f32
    %157 = vector.broadcast %cst_55 : f32 to vector<2x32xf32>
    %158 = arith.addf %157, %156 : vector<2x32xf32>
    %159 = arith.divf %157, %158 : vector<2x32xf32>
    %160 = vector.extract_strided_slice %146 {offsets = [0, 32], sizes = [2, 32], strides = [1, 1]} : vector<2x96xf32> to vector<2x32xf32>
    %161 = vector.extract_strided_slice %151 {offsets = [0, 32], sizes = [2, 32], strides = [1, 1]} : vector<2x96xf32> to vector<2x32xf32>
    %162 = arith.addf %160, %161 : vector<2x32xf32>
    %163 = arith.negf %162 : vector<2x32xf32>
    %164 = math.exp %163 : vector<2x32xf32>
    %cst_56 = arith.constant 1.000000e+00 : f32
    %165 = vector.broadcast %cst_56 : f32 to vector<2x32xf32>
    %166 = arith.addf %165, %164 : vector<2x32xf32>
    %167 = arith.divf %165, %166 : vector<2x32xf32>
    %168 = vector.extract_strided_slice %146 {offsets = [0, 64], sizes = [2, 32], strides = [1, 1]} : vector<2x96xf32> to vector<2x32xf32>
    %169 = vector.extract_strided_slice %151 {offsets = [0, 64], sizes = [2, 32], strides = [1, 1]} : vector<2x96xf32> to vector<2x32xf32>
    %170 = arith.mulf %159, %169 : vector<2x32xf32>
    %171 = arith.addf %168, %170 : vector<2x32xf32>
    %172 = math.tanh %171 : vector<2x32xf32>
    %cst_57 = arith.constant 1.000000e+00 : f32
    %173 = vector.broadcast %cst_57 : f32 to vector<2x32xf32>
    %174 = arith.subf %173, %167 : vector<2x32xf32>
    %175 = arith.mulf %174, %172 : vector<2x32xf32>
    %176 = arith.mulf %167, %144 : vector<2x32xf32>
    %177 = arith.addf %175, %176 : vector<2x32xf32>
    %c8 = arith.constant 8 : index
    %c0_58 = arith.constant 0 : index
    %178 = vector.load %arg11[%c8, %c0_58] : memref<16x32xf32, #tpu.memory_space<vmem>>, vector<2x32xf32>
    tpu.vector_store %arg11[%c8, %c0_58], %177 {strides = array<i32>} : memref<16x32xf32, #tpu.memory_space<vmem>>, vector<2x32xf32>,
    %179 = vector.extract_strided_slice %12 {offsets = [10, 0], sizes = [2, 96], strides = [1, 1]} : vector<16x96xf32> to vector<2x96xf32>
    %c0_59 = arith.constant 0 : index
    %c0_60 = arith.constant 0 : index
    %180 = vector.load %arg6[%c0_59, %c0_60] : memref<32x96xf32, #tpu.memory_space<vmem>>, vector<32x96xf32>
    %cst_61 = arith.constant dense<0.000000e+00> : vector<2x96xf32>
    %181 = tpu.matmul %177, %180, %cst_61 {dimension_numbers = #tpu.dot_dimension_numbers<[1], [0], [0], [1], [0, 0, 1, 1], [], []>} : vector<2x32xf32>, vector<32x96xf32>, vector<2x96xf32> -> vector<2x96xf32>
    %c0_62 = arith.constant 0 : index
    %c0_63 = arith.constant 0 : index
    %182 = vector.load %arg7[%c0_62, %c0_63] : memref<1x96xf32, #tpu.memory_space<vmem>>, vector<1x96xf32>
    %183 = vector.broadcast %182 : vector<1x96xf32> to vector<2x96xf32>
    %184 = arith.addf %181, %183 : vector<2x96xf32>
    %185 = vector.extract_strided_slice %179 {offsets = [0, 0], sizes = [2, 32], strides = [1, 1]} : vector<2x96xf32> to vector<2x32xf32>
    %186 = vector.extract_strided_slice %184 {offsets = [0, 0], sizes = [2, 32], strides = [1, 1]} : vector<2x96xf32> to vector<2x32xf32>
    %187 = arith.addf %185, %186 : vector<2x32xf32>
    %188 = arith.negf %187 : vector<2x32xf32>
    %189 = math.exp %188 : vector<2x32xf32>
    %cst_64 = arith.constant 1.000000e+00 : f32
    %190 = vector.broadcast %cst_64 : f32 to vector<2x32xf32>
    %191 = arith.addf %190, %189 : vector<2x32xf32>
    %192 = arith.divf %190, %191 : vector<2x32xf32>
    %193 = vector.extract_strided_slice %179 {offsets = [0, 32], sizes = [2, 32], strides = [1, 1]} : vector<2x96xf32> to vector<2x32xf32>
    %194 = vector.extract_strided_slice %184 {offsets = [0, 32], sizes = [2, 32], strides = [1, 1]} : vector<2x96xf32> to vector<2x32xf32>
    %195 = arith.addf %193, %194 : vector<2x32xf32>
    %196 = arith.negf %195 : vector<2x32xf32>
    %197 = math.exp %196 : vector<2x32xf32>
    %cst_65 = arith.constant 1.000000e+00 : f32
    %198 = vector.broadcast %cst_65 : f32 to vector<2x32xf32>
    %199 = arith.addf %198, %197 : vector<2x32xf32>
    %200 = arith.divf %198, %199 : vector<2x32xf32>
    %201 = vector.extract_strided_slice %179 {offsets = [0, 64], sizes = [2, 32], strides = [1, 1]} : vector<2x96xf32> to vector<2x32xf32>
    %202 = vector.extract_strided_slice %184 {offsets = [0, 64], sizes = [2, 32], strides = [1, 1]} : vector<2x96xf32> to vector<2x32xf32>
    %203 = arith.mulf %192, %202 : vector<2x32xf32>
    %204 = arith.addf %201, %203 : vector<2x32xf32>
    %205 = math.tanh %204 : vector<2x32xf32>
    %cst_66 = arith.constant 1.000000e+00 : f32
    %206 = vector.broadcast %cst_66 : f32 to vector<2x32xf32>
    %207 = arith.subf %206, %200 : vector<2x32xf32>
    %208 = arith.mulf %207, %205 : vector<2x32xf32>
    %209 = arith.mulf %200, %177 : vector<2x32xf32>
    %210 = arith.addf %208, %209 : vector<2x32xf32>
    %c10 = arith.constant 10 : index
    %c0_67 = arith.constant 0 : index
    %211 = vector.load %arg11[%c10, %c0_67] : memref<16x32xf32, #tpu.memory_space<vmem>>, vector<2x32xf32>
    tpu.vector_store %arg11[%c10, %c0_67], %210 {strides = array<i32>} : memref<16x32xf32, #tpu.memory_space<vmem>>, vector<2x32xf32>,
    %212 = vector.extract_strided_slice %12 {offsets = [12, 0], sizes = [2, 96], strides = [1, 1]} : vector<16x96xf32> to vector<2x96xf32>
    %c0_68 = arith.constant 0 : index
    %c0_69 = arith.constant 0 : index
    %213 = vector.load %arg6[%c0_68, %c0_69] : memref<32x96xf32, #tpu.memory_space<vmem>>, vector<32x96xf32>
    %cst_70 = arith.constant dense<0.000000e+00> : vector<2x96xf32>
    %214 = tpu.matmul %210, %213, %cst_70 {dimension_numbers = #tpu.dot_dimension_numbers<[1], [0], [0], [1], [0, 0, 1, 1], [], []>} : vector<2x32xf32>, vector<32x96xf32>, vector<2x96xf32> -> vector<2x96xf32>
    %c0_71 = arith.constant 0 : index
    %c0_72 = arith.constant 0 : index
    %215 = vector.load %arg7[%c0_71, %c0_72] : memref<1x96xf32, #tpu.memory_space<vmem>>, vector<1x96xf32>
    %216 = vector.broadcast %215 : vector<1x96xf32> to vector<2x96xf32>
    %217 = arith.addf %214, %216 : vector<2x96xf32>
    %218 = vector.extract_strided_slice %212 {offsets = [0, 0], sizes = [2, 32], strides = [1, 1]} : vector<2x96xf32> to vector<2x32xf32>
    %219 = vector.extract_strided_slice %217 {offsets = [0, 0], sizes = [2, 32], strides = [1, 1]} : vector<2x96xf32> to vector<2x32xf32>
    %220 = arith.addf %218, %219 : vector<2x32xf32>
    %221 = arith.negf %220 : vector<2x32xf32>
    %222 = math.exp %221 : vector<2x32xf32>
    %cst_73 = arith.constant 1.000000e+00 : f32
    %223 = vector.broadcast %cst_73 : f32 to vector<2x32xf32>
    %224 = arith.addf %223, %222 : vector<2x32xf32>
    %225 = arith.divf %223, %224 : vector<2x32xf32>
    %226 = vector.extract_strided_slice %212 {offsets = [0, 32], sizes = [2, 32], strides = [1, 1]} : vector<2x96xf32> to vector<2x32xf32>
    %227 = vector.extract_strided_slice %217 {offsets = [0, 32], sizes = [2, 32], strides = [1, 1]} : vector<2x96xf32> to vector<2x32xf32>
    %228 = arith.addf %226, %227 : vector<2x32xf32>
    %229 = arith.negf %228 : vector<2x32xf32>
    %230 = math.exp %229 : vector<2x32xf32>
    %cst_74 = arith.constant 1.000000e+00 : f32
    %231 = vector.broadcast %cst_74 : f32 to vector<2x32xf32>
    %232 = arith.addf %231, %230 : vector<2x32xf32>
    %233 = arith.divf %231, %232 : vector<2x32xf32>
    %234 = vector.extract_strided_slice %212 {offsets = [0, 64], sizes = [2, 32], strides = [1, 1]} : vector<2x96xf32> to vector<2x32xf32>
    %235 = vector.extract_strided_slice %217 {offsets = [0, 64], sizes = [2, 32], strides = [1, 1]} : vector<2x96xf32> to vector<2x32xf32>
    %236 = arith.mulf %225, %235 : vector<2x32xf32>
    %237 = arith.addf %234, %236 : vector<2x32xf32>
    %238 = math.tanh %237 : vector<2x32xf32>
    %cst_75 = arith.constant 1.000000e+00 : f32
    %239 = vector.broadcast %cst_75 : f32 to vector<2x32xf32>
    %240 = arith.subf %239, %233 : vector<2x32xf32>
    %241 = arith.mulf %240, %238 : vector<2x32xf32>
    %242 = arith.mulf %233, %210 : vector<2x32xf32>
    %243 = arith.addf %241, %242 : vector<2x32xf32>
    %c12 = arith.constant 12 : index
    %c0_76 = arith.constant 0 : index
    %244 = vector.load %arg11[%c12, %c0_76] : memref<16x32xf32, #tpu.memory_space<vmem>>, vector<2x32xf32>
    tpu.vector_store %arg11[%c12, %c0_76], %243 {strides = array<i32>} : memref<16x32xf32, #tpu.memory_space<vmem>>, vector<2x32xf32>,
    %245 = vector.extract_strided_slice %12 {offsets = [14, 0], sizes = [2, 96], strides = [1, 1]} : vector<16x96xf32> to vector<2x96xf32>
    %c0_77 = arith.constant 0 : index
    %c0_78 = arith.constant 0 : index
    %246 = vector.load %arg6[%c0_77, %c0_78] : memref<32x96xf32, #tpu.memory_space<vmem>>, vector<32x96xf32>
    %cst_79 = arith.constant dense<0.000000e+00> : vector<2x96xf32>
    %247 = tpu.matmul %243, %246, %cst_79 {dimension_numbers = #tpu.dot_dimension_numbers<[1], [0], [0], [1], [0, 0, 1, 1], [], []>} : vector<2x32xf32>, vector<32x96xf32>, vector<2x96xf32> -> vector<2x96xf32>
    %c0_80 = arith.constant 0 : index
    %c0_81 = arith.constant 0 : index
    %248 = vector.load %arg7[%c0_80, %c0_81] : memref<1x96xf32, #tpu.memory_space<vmem>>, vector<1x96xf32>
    %249 = vector.broadcast %248 : vector<1x96xf32> to vector<2x96xf32>
    %250 = arith.addf %247, %249 : vector<2x96xf32>
    %251 = vector.extract_strided_slice %245 {offsets = [0, 0], sizes = [2, 32], strides = [1, 1]} : vector<2x96xf32> to vector<2x32xf32>
    %252 = vector.extract_strided_slice %250 {offsets = [0, 0], sizes = [2, 32], strides = [1, 1]} : vector<2x96xf32> to vector<2x32xf32>
    %253 = arith.addf %251, %252 : vector<2x32xf32>
    %254 = arith.negf %253 : vector<2x32xf32>
    %255 = math.exp %254 : vector<2x32xf32>
    %cst_82 = arith.constant 1.000000e+00 : f32
    %256 = vector.broadcast %cst_82 : f32 to vector<2x32xf32>
    %257 = arith.addf %256, %255 : vector<2x32xf32>
    %258 = arith.divf %256, %257 : vector<2x32xf32>
    %259 = vector.extract_strided_slice %245 {offsets = [0, 32], sizes = [2, 32], strides = [1, 1]} : vector<2x96xf32> to vector<2x32xf32>
    %260 = vector.extract_strided_slice %250 {offsets = [0, 32], sizes = [2, 32], strides = [1, 1]} : vector<2x96xf32> to vector<2x32xf32>
    %261 = arith.addf %259, %260 : vector<2x32xf32>
    %262 = arith.negf %261 : vector<2x32xf32>
    %263 = math.exp %262 : vector<2x32xf32>
    %cst_83 = arith.constant 1.000000e+00 : f32
    %264 = vector.broadcast %cst_83 : f32 to vector<2x32xf32>
    %265 = arith.addf %264, %263 : vector<2x32xf32>
    %266 = arith.divf %264, %265 : vector<2x32xf32>
    %267 = vector.extract_strided_slice %245 {offsets = [0, 64], sizes = [2, 32], strides = [1, 1]} : vector<2x96xf32> to vector<2x32xf32>
    %268 = vector.extract_strided_slice %250 {offsets = [0, 64], sizes = [2, 32], strides = [1, 1]} : vector<2x96xf32> to vector<2x32xf32>
    %269 = arith.mulf %258, %268 : vector<2x32xf32>
    %270 = arith.addf %267, %269 : vector<2x32xf32>
    %271 = math.tanh %270 : vector<2x32xf32>
    %cst_84 = arith.constant 1.000000e+00 : f32
    %272 = vector.broadcast %cst_84 : f32 to vector<2x32xf32>
    %273 = arith.subf %272, %266 : vector<2x32xf32>
    %274 = arith.mulf %273, %271 : vector<2x32xf32>
    %275 = arith.mulf %266, %243 : vector<2x32xf32>
    %276 = arith.addf %274, %275 : vector<2x32xf32>
    %c14 = arith.constant 14 : index
    %c0_85 = arith.constant 0 : index
    %277 = vector.load %arg11[%c14, %c0_85] : memref<16x32xf32, #tpu.memory_space<vmem>>, vector<2x32xf32>
    tpu.vector_store %arg11[%c14, %c0_85], %276 {strides = array<i32>} : memref<16x32xf32, #tpu.memory_space<vmem>>, vector<2x32xf32>,
    %c0_86 = arith.constant 0 : index
    %c0_87 = arith.constant 0 : index
    %278 = vector.load %arg11[%c0_86, %c0_87] : memref<16x32xf32, #tpu.memory_space<vmem>>, vector<16x32xf32>
    %c0_88 = arith.constant 0 : index
    %c0_89 = arith.constant 0 : index
    %279 = vector.load %arg8[%c0_88, %c0_89] : memref<32x8xf32, #tpu.memory_space<vmem>>, vector<32x8xf32>
    %cst_90 = arith.constant dense<0.000000e+00> : vector<16x8xf32>
    %280 = tpu.matmul %278, %279, %cst_90 {dimension_numbers = #tpu.dot_dimension_numbers<[1], [0], [0], [1], [0, 0, 1, 1], [], []>} : vector<16x32xf32>, vector<32x8xf32>, vector<16x8xf32> -> vector<16x8xf32>
    %c0_91 = arith.constant 0 : index
    %c0_92 = arith.constant 0 : index
    %281 = vector.load %arg9[%c0_91, %c0_92] : memref<1x8xf32, #tpu.memory_space<vmem>>, vector<1x8xf32>
    %282 = vector.broadcast %281 : vector<1x8xf32> to vector<16x8xf32>
    %283 = arith.addf %280, %282 : vector<16x8xf32>
    %c0_93 = arith.constant 0 : index
    %c0_94 = arith.constant 0 : index
    %284 = vector.load %arg10[%c0_93, %c0_94] : memref<16x8xf32, #tpu.memory_space<vmem>>, vector<16x8xf32>
    tpu.vector_store %arg10[%c0_93, %c0_94], %283 {strides = array<i32>} : memref<16x8xf32, #tpu.memory_space<vmem>>, vector<16x8xf32>,
    return
  }
}

</mosaic_0001>

<bundles_post_ra>
// kernel: tpu_custom_call.1
= control target key start
LH: loop header
LB: loop body
LE: loop exit
PB: predicated region body
PF: predicated region fallthrough
CT: control target
= control target key end

     0   :  { %17 = vsyncpa [#allocation3], 0  ;;  %s2181_s0 = inlined_call_operand.vmem [shape: f32[16,12], index: 0, kind: input, shape index: {}]   ;;  %s2182_s1 = inlined_call_operand.vmem [shape: f32[2,32], index: 1, kind: input, shape index: {}]   ;;  %s2183_s2 = inlined_call_operand.hbm [shape: f32[12,32], index: 2, kind: input, shape index: {}]   ;;  %s2184_s3 = inlined_call_operand.hbm [shape: f32[1,32], index: 3, kind: input, shape index: {}]   ;;  %s2185_s4 = inlined_call_operand.vmem [shape: f32[32,96], index: 4, kind: input, shape index: {}]   ;;  %s2186_s5 = inlined_call_operand.hbm [shape: f32[1,96], index: 5, kind: input, shape index: {}]   ;;  %s2187_s6 = inlined_call_operand.hbm [shape: f32[32,96], index: 6, kind: input, shape index: {}]   ;;  %s2188_s7 = inlined_call_operand.vmem [shape: f32[1,96], index: 7, kind: input, shape index: {}]   ;;  %s2189_s8 = inlined_call_operand.vmem [shape: f32[32,8], index: 8, kind: input, shape index: {}]   ;;  %s2190_s9 = inlined_call_operand.vmem [shape: f32[1,8], index: 9, kind: input, shape index: {}]   ;;  %s2191_s10 = inlined_call_operand.vmem [shape: f32[16,8], index: 10, kind: output, shape index: {0}]   ;;  %s2192_s11 = inlined_call_operand.hbm [shape: f32[16,32], index: 11, kind: output, shape index: {1}]  }
   0x1   :  { %18 = vsyncpa [#allocation6], 0 }
   0x2   :  { %19 = vsyncpa [#allocation9], 0 }
   0x3   :  { %20 = vsyncpa [#allocation4], 0  ;;  %s1819_s17 = smov [#allocation5]   ;;  %s1820_s19 = smov [#allocation2]  }
   0x4   :  { %s43_s18 = sshll.u32 %s1819_s17, 4  ;;  %s30_s20 = sshll.u32 %s1820_s19, 4  ;;  %s44_s18 = int_to_ptr.vmem [resolvable:$true] %s43_s18  ;;  %s1893_s20 = int_to_ptr.vmem [resolvable:$true] %s30_s20 }
   0x5   :  { %s1701_s23 = scalar_lea.hbm %s2184_s3, 16 }
   0x6   :  { %p1702_p0 = scmp.ne.s32.totalorder %s2184_s3, %s1701_s23  ;;  %p1705_p1 = scmp.lt.u32.totalorder %s1701_s23, %s2184_s3 }
   0x8   :  { %p1707_p2 = pnand %p1705_p1, %p1702_p0 }
   0xa   :  { %1710 = shalt.err (!%p1707_p2)
}
   0xb   :  { %s1711_s28 = scalar_lea.vmem %s44_s18, 16  ;;  %s1715_s29 = scalar_lea.vmem %s44_s18, 32 }
   0xc   :  { %p1712_p3 = scmp.ne.s32.totalorder %s44_s18, %s1711_s28  ;;  %p1716_p4 = scmp.lt.s32.totalorder %s44_s18, %s44_s18 }
   0xd   :  { %p1717_p5 = scmp.lt.s32.totalorder %s1715_s29, %s1711_s28 }
   0xf   :  { %p1718_p6 = por %p1717_p5, %p1716_p4 }
  0x11   :  { %p1719_p7 = pnand %p1718_p6, %p1712_p3 }
  0x13   :  { %1722 = shalt.err (!%p1719_p7)
}
  0x14   :  { %46 = dma.hbm_to_vmem [thread:$0]  %s2184_s3, 16, %s44_s18, [#allocation6]  }
  0x15   :  { %s1723_s15 = scalar_lea.hbm %s2183_s2, 256 }
  0x16   :  { %p1724_p8 = scmp.ne.s32.totalorder %s2183_s2, %s1723_s15  ;;  %p1727_p9 = scmp.lt.u32.totalorder %s1723_s15, %s2183_s2 }
  0x18   :  { %p1729_p10 = pnand %p1727_p9, %p1724_p8 }
  0x1a   :  { %1732 = shalt.err (!%p1729_p10)
}
  0x1b   :  { %s1733_s22 = scalar_lea.vmem %s1893_s20, 256  ;;  %p1738_p12 = scmp.lt.s32.totalorder %s1893_s20, %s1893_s20 }
  0x1c   :  { %p1734_p11 = scmp.ne.s32.totalorder %s1893_s20, %s1733_s22  ;;  %p1739_p13 = scmp.lt.s32.totalorder %s1733_s22, %s1733_s22 }
  0x1e   :  { %p1740_p0 = por %p1739_p13, %p1738_p12 }
  0x20   :  { %p1741_p1 = pnand %p1740_p0, %p1734_p11 }
  0x22   :  { %1744 = shalt.err (!%p1741_p1)
}
  0x23   :  { %s1821_s3 = smov 128   ;;  %s1822_s18 = smov 8  }
  0x24   :  { %36 = dma.hbm_to_vmem [thread:$0]  %s2183_s2, 256, %s1893_s20, [#allocation3], %s1821_s3, %s1821_s3, %s1822_s18  }
  0x25   :  { %s1823_s25 = smov [#allocation7]   ;;  %s1824_s27 = smov [#allocation8]  }
  0x26   :  { %s55_s26 = sshll.u32 %s1823_s25, 4  ;;  %s64_s28 = sshll.u32 %s1824_s27, 4  ;;  %s56_s26 = int_to_ptr.vmem [resolvable:$true] %s55_s26  ;;  %s1927_s28 = int_to_ptr.vmem [resolvable:$true] %s64_s28 }
  0x27   :  { %s1745_s12 = scalar_lea.hbm %s2186_s5, 16 }
  0x28   :  { %p1746_p2 = scmp.ne.s32.totalorder %s2186_s5, %s1745_s12  ;;  %p1749_p3 = scmp.lt.u32.totalorder %s1745_s12, %s2186_s5 }
  0x2a   :  { %p1751_p4 = pnand %p1749_p3, %p1746_p2 }
  0x2c   :  { %1754 = shalt.err (!%p1751_p4)
}
  0x2d   :  { %s1755_s2 = scalar_lea.vmem %s56_s26, 16  ;;  %s1759_s20 = scalar_lea.vmem %s56_s26, 32 }
  0x2e   :  { %p1756_p5 = scmp.ne.s32.totalorder %s56_s26, %s1755_s2  ;;  %p1760_p6 = scmp.lt.s32.totalorder %s56_s26, %s56_s26 }
  0x2f   :  { %p1761_p7 = scmp.lt.s32.totalorder %s1759_s20, %s1755_s2 }
  0x31   :  { %p1762_p8 = por %p1761_p7, %p1760_p6 }
  0x33   :  { %p1763_p9 = pnand %p1762_p8, %p1756_p5 }
  0x35   :  { %1766 = shalt.err (!%p1763_p9)
}
  0x36   :  { %58 = dma.hbm_to_vmem [thread:$0]  %s2186_s5, 16, %s56_s26, [#allocation6]  }
  0x37   :  { %s1767_s23 = scalar_lea.hbm %s2187_s6, 512 }
  0x38   :  { %p1768_p10 = scmp.ne.s32.totalorder %s2187_s6, %s1767_s23  ;;  %p1771_p11 = scmp.lt.u32.totalorder %s1767_s23, %s2187_s6 }
  0x3a   :  { %p1773_p12 = pnand %p1771_p11, %p1768_p10 }
  0x3c   :  { %1776 = shalt.err (!%p1773_p12)
}
  0x3d   :  { %s1777_s30 = scalar_lea.vmem %s1927_s28, 512  ;;  %p1782_p0 = scmp.lt.s32.totalorder %s1927_s28, %s1927_s28 }
  0x3e   :  { %p1778_p13 = scmp.ne.s32.totalorder %s1927_s28, %s1777_s30  ;;  %p1783_p1 = scmp.lt.s32.totalorder %s1777_s30, %s1777_s30 }
  0x40   :  { %p1784_p2 = por %p1783_p1, %p1782_p0 }
  0x42   :  { %p1785_p3 = pnand %p1784_p2, %p1778_p13 }
  0x44   :  { %1788 = shalt.err (!%p1785_p3)
}
  0x45   :  { %70 = dma.hbm_to_vmem [thread:$0]  %s2187_s6, 512, %s1927_s28, [#allocation9], %s1821_s3, %s1821_s3, %s1822_s18  }
  0x46   :  { %1811 = dma.done.wait [#allocation3], 256  }
  0x47   :  { %1812 = vsyncadd [#allocation3], 4294967040 }
  0x48   :  { %1813 = dma.done.wait [#allocation6], 32  }
  0x49   :  { %1814 = vsyncadd [#allocation6], 4294967264 }
  0x4a   :  { %1815 = dma.done.wait [#allocation9], 512  }
  0x4b   :  { %1816 = vsyncadd [#allocation9], 4294966784  ;;  %vm107_vm0 = vcmask 1043456   ;;  %vm100_vm1 = vcmask 97280   ;;  %vm1825_vm2 = vmmov 1   ;;  %v91_v0 = vld [vmem:[#allocation2] sm:$0xff] }
  0x4c   :  { %vm1570_vm3 = vmpackc.low %vm107_vm0, %vm1825_vm2  ;;  %v92_v1 = vld [vmem:[#allocation2 + $0x8] sm:$0xf]  ;;  %v89_v2 = vld [vmem:[%s2181_s0] sm:$0xff]  ;;  %v1826_v11 = vmov 0.0|0.0   ;;  %vm1827_vm4 = vmmov 0   ;;  %v1828_v15 = vmov 0.0  }
  0x4d   :  { %v1569_v3 = vpack.c.bf16 %v92_v1, %v91_v0  ;;  %1456 = vmatprep.mubr.msk.f32.mxu0 %vm100_vm1, %v89_v2  ;;  %v282_v4 = vld [vmem:[#allocation8] sm:$0xff]  ;;  %v283_v5 = vld [vmem:[#allocation8 + $0x8] sm:$0xff]  ;;  %v189_v7 = vld [vmem:[%s2185_s4 + $0x8] sm:$0xff]  ;;  %vm199_vm5 = vcmask 261120   ;;  %s1831_s24 = smov 32   ;;  %vm399_vm6 = vcmask 254976  }
  0x4e   :  { %v188_v6 = vld [vmem:[%s2185_s4] sm:$0xff]  ;;  %v90_v8 = vld [vmem:[%s2181_s0 + $0x8] sm:$0xff]  ;;  %v1974_v9 = vpack.c.bf16 %v283_v5, %v282_v4  ;;  %v190_v17 = vld [vmem:[%s2185_s4 + $0x10] sm:$0xff]  ;;  %vm518_vm7 = vcmask 257026   ;;  %vm762_vm8 = vcmask 261126   ;;  %vm640_vm9 = vcmask 259076  }
  0x4f   :  { %1571 = vmatprep.subr.msk.bf16.mxu0 %vm1570_vm3, %v1569_v3  ;;  %v1575_v10 = vpack.c.bf16 %v189_v7, %v188_v6  ;;  %v284_v12 = vld [vmem:[#allocation8 + $0x10] sm:$0xff]  ;;  %v285_v13 = vld [vmem:[#allocation8 + $0x18] sm:$0xff]  ;;  %v281_v16 = vld [vmem:[%s2182_s1] sm:$0x3] }
  0x50   :  { %1574 = vmatpush3.bf16.msk.msra.mxu0 %vm1570_vm3, %v1569_v3  ;;  %v1979_v14 = vpack.c.bf16 %v285_v13, %v284_v12  ;;  %v191_v18 = vld [vmem:[%s2185_s4 + $0x18] sm:$0xff]  ;;  %v1362_v20 = vld [vmem:[#allocation5] ss:$0 sm:$0xff]  ;;  %v2007_v27 = vld [vmem:[%s2188_s7] ss:$0 sm:$0xff]  ;;  %s1829_s4 = smov 64  }
  0x51   :  { %1583 = vmatprep.subr.bf16.mxu0 %v1826_v11  ;;  %1576 = vmatprep.subr.bf16.mxu1 %v1575_v10  ;;  %v1579_v19 = vpack.c.bf16 %v191_v18, %v190_v17  ;;  %v1366_v31 = vld [vmem:[#allocation7] ss:$0 sm:$0xff]  ;;  %s1830_s7 = smov 96  }
  0x52   :  { %1578 = vmatpush3.bf16.msra.mxu1 %v1575_v10 }
  0x53   :  { %1457 = vmatmul.mubr.msk.f32.vlgmr.msra.gmra.mrb[0].mxu0 %vm100_vm1, %v90_v8  ;;  %1580 = vmatprep.subr.bf16.mxu1 %v1579_v19 }
  0x54   :  { %1585 = vmatpush3.bf16.msra.mxu0 %v1974_v9  ;;  %1478 = vmatprep.mubr.msk.f32.mxu0 %vm1827_vm4, %v1828_v15 }
  0x55   :  { %1586 = vmatprep.subr.bf16.mxu0 %v1826_v11 }
  0x56   :  { %1582 = vmatpush3.bf16.msra.mxu1 %v1579_v19 }
  0x57   :  { %1589 = vmatprep.subr.bf16.mxu1 %v1826_v11 }
  0x58   :  { %1588 = vmatpush3.bf16.msra.mxu0 %v1979_v14 }
  0x59   :  { %1595 = vmatprep.subr.bf16.mxu0 %v1826_v11 }
  0x5b   :  { %1479 = vmatmul.mubr.msk.f32.vlgmr.msra.gmra.mrb[2].mxu0 %vm199_vm5, %v281_v16 }
  0x5c   :  { %1597 = vmatpush3.bf16.msra.mxu0 %v1974_v9  ;;  %1500 = vmatprep.mubr.msk.f32.mxu0 %vm1827_vm4, %v1828_v15 }
  0x5d   :  { %1598 = vmatprep.subr.bf16.mxu0 %v1826_v11 }
  0x60   :  { %1600 = vmatpush3.bf16.msra.mxu0 %v1979_v14 }
  0x61   :  { %1607 = vmatprep.subr.bf16.mxu0 %v1826_v11 }
 0x126   :  { %v1458_v21 = vpop.f32.mrb[0].mxu0 }
 0x127   :  { %v183_v22 = vadd.f32 %v1458_v21, %v1362_v20  ;;  %v177_v23 = vpop.f32.mrb[1].mxu0 }
 0x128   :  { %v178_v24 = vadd.f32 %v1362_v20, %v177_v23 }
 0x129   :  { %v187_v26 = vmax.f32 %v183_v22, 0.0 }
 0x12a   :  { %v186_v25 = vmax.f32 %v178_v24, 0.0 }
 0x12c   :  { %1467 = vmatprep.mubr.msk.f32.mxu1 %vm199_vm5, %v186_v25 }
 0x12d   :  { %1468 = vmatmul.mubr.msk.f32.vlgmr.msra.gmra.mrb[0].mxu1 %vm199_vm5, %v187_v26 }
 0x12e   :  { %v362_v28 = vpop.f32.mrb[2].mxu0  ;;  %1591 = vmatpush3.bf16.msra.mxu1 %v1974_v9  ;;  %1489 = vmatprep.mubr.msk.f32.mxu1 %vm1827_vm4, %v1828_v15 }
 0x12f   :  { %v363_v29 = vadd.f32 %v2007_v27, %v362_v28  ;;  %v1480_v30 = vpop.f32.mrb[3].mxu0  ;;  %1592 = vmatprep.subr.bf16.mxu1 %v1826_v11 }
 0x131   :  { %374 = vrot.lane.b32.xlu0 %v363_v29, %s1829_s4 }
 0x132   :  { %1594 = vmatpush3.bf16.msra.mxu1 %v1979_v14 }
 0x133   :  { %1601 = vmatprep.subr.bf16.mxu1 %v1826_v11 }
 0x1a3   :  { %v375_v40 = vpop.permute.xlu0 %374 }
 0x200   :  { %v1469_v32 = vpop.f32.mrb[0].mxu1 }
 0x201   :  { %v2018_v33 = vadd.f32 %v1469_v32, %v1366_v31  ;;  %v272_v34 = vpop.f32.mrb[1].mxu1 }
 0x202   :  { %v2020_v35 = vadd.f32 %v1366_v31, %v272_v34 }
 0x204   :  { %v366_v36 = vadd.f32 %v363_v29, %v2020_v35 }
 0x206   :  { %v1371_v37 = vmul.f32 -1.442695, %v366_v36 }
 0x208   :  { %1653 = vpow2.f32 %v1371_v37 }
 0x212   :  { %v1654_v38 = vpop.eup %1653 }
 0x213   :  { %v370_v39 = vadd.f32 1.0, %v1654_v38 }
 0x215   :  { %1655 = vrcp.f32 %v370_v39 }
 0x21f   :  { %v1656_v41 = vpop.eup %1655 }
 0x220   :  { %v377_v42 = vmul.f32 %v1656_v41, %v375_v40  ;;  %v384_v47 = vsub.f32 1.0, %v1656_v41 }
 0x222   :  { %379 = vrot.lane.b32.xlu0 %v377_v42, %s1829_s4 }
 0x294   :  { %v380_v43 = vpop.permute.xlu0 %379 }
 0x295   :  { %v382_v44 = vadd.f32 %v380_v43, %v2020_v35 }
 0x297   :  { %1657 = vtanh.f32 %v382_v44 }
 0x2a1   :  { %v1658_v45 = vpop.eup %1657 }
 0x2a2   :  { %386 = vrot.lane.b32.xlu1 %v1658_v45, %s1830_s7 }
 0x2a6   :  { %390 = vrot.lane.b32.xlu1 %v281_v16, %s1831_s24 }
 0x314   :  { %v387_v46 = vpop.permute.xlu1 %386 }
 0x315   :  { %v389_v49 = vmul.f32 %v387_v46, %v384_v47 }
 0x318   :  { %v391_v48 = vpop.permute.xlu1 %390 }
 0x319   :  { %v393_v50 = vmul.f32 %v1656_v41, %v391_v48 }
 0x31b   :  { %v394_v51 = vadd.f32 %v393_v50, %v389_v49 }
 0x31d   :  { %396 = vrot.lane.b32.xlu0 %v394_v51, %s1830_s7  ;;  %v510_v3 = vrot.slane %v394_v51, 6 }
 0x38f   :  { %v397_v52 = vpop.permute.xlu0 %396 }
 0x390   :  { %400 = vst.msk [vmem:[#allocation10] sm:$0x3] %vm399_vm6, %v397_v52  ;;  %1490 = vmatmul.mubr.msk.f32.vlgmr.msra.gmra.mrb[2].mxu1 %vm199_vm5, %v397_v52 }
 0x391   :  { %1603 = vmatpush3.bf16.msra.mxu1 %v1974_v9  ;;  %1511 = vmatprep.mubr.msk.f32.mxu1 %vm1827_vm4, %v1828_v15 }
 0x392   :  { %1604 = vmatprep.subr.bf16.mxu1 %v1826_v11 }
 0x395   :  { %1606 = vmatpush3.bf16.msra.mxu1 %v1979_v14 }
 0x396   :  { %1613 = vmatprep.subr.bf16.mxu1 %v1826_v11 }
 0x463   :  { %v480_v53 = vpop.f32.mrb[2].mxu1 }
 0x464   :  { %v481_v54 = vadd.f32 %v2007_v27, %v480_v53  ;;  %v1491_v55 = vpop.f32.mrb[3].mxu1 }
 0x466   :  { %v485_v56 = vrot.slane %v481_v54, 6 }
 0x468   :  { %494 = vrot.lane.b32.xlu1 %v485_v56, %s1829_s4  ;;  %v487_v57 = vadd.f32 %v485_v56, %v2020_v35 }
 0x46a   :  { %v1374_v58 = vmul.f32 -1.442695, %v487_v57 }
 0x46c   :  { %1659 = vpow2.f32 %v1374_v58 }
 0x476   :  { %v1660_v59 = vpop.eup %1659 }
 0x477   :  { %v491_v60 = vadd.f32 1.0, %v1660_v59 }
 0x479   :  { %1661 = vrcp.f32 %v491_v60 }
 0x483   :  { %v1662_v61 = vpop.eup %1661 }
 0x484   :  { %v504_v4 = vsub.f32 1.0, %v1662_v61  ;;  %v512_v7 = vmul.f32 %v1662_v61, %v510_v3 }
 0x4da   :  { %v495_v62 = vpop.permute.xlu1 %494 }
 0x4db   :  { %v497_v63 = vmul.f32 %v1662_v61, %v495_v62 }
 0x4dd   :  { %499 = vrot.lane.b32.xlu0 %v497_v63, %s1829_s4 }
 0x54f   :  { %v500_v0 = vpop.permute.xlu0 %499 }
 0x550   :  { %v502_v1 = vadd.f32 %v500_v0, %v2020_v35 }
 0x552   :  { %1663 = vtanh.f32 %v502_v1 }
 0x55c   :  { %v1664_v2 = vpop.eup %1663 }
 0x55d   :  { %506 = vrot.lane.b32.xlu1 %v1664_v2, %s1830_s7 }
 0x5cf   :  { %v507_v5 = vpop.permute.xlu1 %506 }
 0x5d0   :  { %v509_v6 = vmul.f32 %v507_v5, %v504_v4 }
 0x5d2   :  { %v2041_v8 = vadd.f32 %v512_v7, %v509_v6 }
 0x5d4   :  { %v531_v10 = vrot.slane %v2041_v8, 2  ;;  %v632_v31 = vrot.slane %v2041_v8, 6 }
 0x5d6   :  { %532 = vrot.lane.b32.xlu0 %v531_v10, %s1830_s7 }
 0x648   :  { %v533_v12 = vpop.permute.xlu0 %532 }
 0x649   :  { %1501 = vmatmul.mubr.msk.f32.vlgmr.msra.gmra.mrb[4].mxu0 %vm199_vm5, %v533_v12 }
 0x64a   :  { %1609 = vmatpush3.bf16.msra.mxu0 %v1974_v9  ;;  %1522 = vmatprep.mubr.msk.f32.mxu0 %vm1827_vm4, %v1828_v15 }
 0x64b   :  { %1610 = vmatprep.subr.bf16.mxu0 %v1826_v11 }
 0x64e   :  { %1612 = vmatpush3.bf16.msra.mxu0 %v1979_v14 }
 0x64f   :  { %1619 = vmatprep.subr.bf16.mxu0 %v1826_v11 }
 0x71c   :  { %v602_v13 = vpop.f32.mrb[4].mxu0 }
 0x71d   :  { %v603_v16 = vadd.f32 %v2007_v27, %v602_v13  ;;  %v1502_v17 = vpop.f32.mrb[5].mxu0 }
 0x71f   :  { %v607_v18 = vrot.slane %v603_v16, 4 }
 0x721   :  { %616 = vrot.lane.b32.xlu1 %v607_v18, %s1829_s4  ;;  %v609_v19 = vadd.f32 %v607_v18, %v2020_v35 }
 0x723   :  { %v1377_v20 = vmul.f32 -1.442695, %v609_v19 }
 0x725   :  { %1665 = vpow2.f32 %v1377_v20 }
 0x72f   :  { %v1666_v21 = vpop.eup %1665 }
 0x730   :  { %v613_v22 = vadd.f32 1.0, %v1666_v21 }
 0x732   :  { %1667 = vrcp.f32 %v613_v22 }
 0x73c   :  { %v1668_v23 = vpop.eup %1667 }
 0x73d   :  { %v626_v30 = vsub.f32 1.0, %v1668_v23  ;;  %v634_v34 = vmul.f32 %v1668_v23, %v632_v31 }
 0x793   :  { %v617_v24 = vpop.permute.xlu1 %616 }
 0x794   :  { %v619_v25 = vmul.f32 %v1668_v23, %v617_v24 }
 0x796   :  { %621 = vrot.lane.b32.xlu0 %v619_v25, %s1829_s4 }
 0x808   :  { %v622_v26 = vpop.permute.xlu0 %621 }
 0x809   :  { %v624_v28 = vadd.f32 %v622_v26, %v2020_v35 }
 0x80b   :  { %1669 = vtanh.f32 %v624_v28 }
 0x815   :  { %v1670_v29 = vpop.eup %1669 }
 0x816   :  { %628 = vrot.lane.b32.xlu1 %v1670_v29, %s1830_s7 }
 0x888   :  { %v629_v32 = vpop.permute.xlu1 %628 }
 0x889   :  { %v631_v36 = vmul.f32 %v629_v32, %v626_v30 }
 0x88b   :  { %v2059_v37 = vadd.f32 %v634_v34, %v631_v36 }
 0x88d   :  { %v653_v38 = vrot.slane %v2059_v37, 4  ;;  %v754_v55 = vrot.slane %v2059_v37, 6 }
 0x88f   :  { %654 = vrot.lane.b32.xlu0 %v653_v38, %s1830_s7 }
 0x901   :  { %v655_v39 = vpop.permute.xlu0 %654 }
 0x902   :  { %1512 = vmatmul.mubr.msk.f32.vlgmr.msra.gmra.mrb[4].mxu1 %vm199_vm5, %v655_v39 }
 0x903   :  { %1615 = vmatpush3.bf16.msra.mxu1 %v1974_v9  ;;  %1533 = vmatprep.mubr.msk.f32.mxu1 %vm1827_vm4, %v1828_v15 }
 0x904   :  { %1616 = vmatprep.subr.bf16.mxu1 %v1826_v11 }
 0x907   :  { %1618 = vmatpush3.bf16.msra.mxu1 %v1979_v14 }
 0x908   :  { %1625 = vmatprep.subr.bf16.mxu1 %v1826_v11 }
 0x9d5   :  { %v724_v40 = vpop.f32.mrb[4].mxu1 }
 0x9d6   :  { %v725_v41 = vadd.f32 %v2007_v27, %v724_v40  ;;  %v1513_v42 = vpop.f32.mrb[5].mxu1 }
 0x9d8   :  { %v729_v43 = vrot.slane %v725_v41, 2 }
 0x9da   :  { %738 = vrot.lane.b32.xlu1 %v729_v43, %s1829_s4  ;;  %v731_v44 = vadd.f32 %v729_v43, %v2020_v35 }
 0x9dc   :  { %v1380_v45 = vmul.f32 -1.442695, %v731_v44 }
 0x9de   :  { %1671 = vpow2.f32 %v1380_v45 }
 0x9e8   :  { %v1672_v46 = vpop.eup %1671 }
 0x9e9   :  { %v735_v47 = vadd.f32 1.0, %v1672_v46 }
 0x9eb   :  { %1673 = vrcp.f32 %v735_v47 }
 0x9f5   :  { %v1674_v48 = vpop.eup %1673 }
 0x9f6   :  { %v748_v54 = vsub.f32 1.0, %v1674_v48  ;;  %v756_v57 = vmul.f32 %v1674_v48, %v754_v55 }
 0xa4c   :  { %v739_v49 = vpop.permute.xlu1 %738 }
 0xa4d   :  { %v741_v50 = vmul.f32 %v1674_v48, %v739_v49 }
 0xa4f   :  { %743 = vrot.lane.b32.xlu0 %v741_v50, %s1829_s4 }
 0xac1   :  { %v744_v51 = vpop.permute.xlu0 %743 }
 0xac2   :  { %v746_v52 = vadd.f32 %v744_v51, %v2020_v35 }
 0xac4   :  { %1675 = vtanh.f32 %v746_v52 }
 0xace   :  { %v1676_v53 = vpop.eup %1675 }
 0xacf   :  { %750 = vrot.lane.b32.xlu1 %v1676_v53, %s1830_s7 }
 0xb41   :  { %v751_v56 = vpop.permute.xlu1 %750 }
 0xb42   :  { %v753_v58 = vmul.f32 %v751_v56, %v748_v54 }
 0xb44   :  { %v2077_v59 = vadd.f32 %v756_v57, %v753_v58 }
 0xb46   :  { %v775_v60 = vrot.slane %v2077_v59, 6 }
 0xb48   :  { %776 = vrot.lane.b32.xlu0 %v775_v60, %s1830_s7 }
 0xbba   :  { %v777_v61 = vpop.permute.xlu0 %776 }
 0xbbb   :  { %1523 = vmatmul.mubr.msk.f32.vlgmr.msra.gmra.mrb[6].mxu0 %vm199_vm5, %v777_v61 }
 0xbbc   :  { %1621 = vmatpush3.bf16.msra.mxu0 %v1974_v9  ;;  %1544 = vmatprep.mubr.msk.f32.mxu0 %vm1827_vm4, %v1828_v15 }
 0xbbd   :  { %1622 = vmatprep.subr.bf16.mxu0 %v1826_v11 }
 0xbc0   :  { %1624 = vmatpush3.bf16.msra.mxu0 %v1979_v14 }
 0xc8e   :  { %v846_v35 = vpop.f32.mrb[6].mxu0 }
 0xc8f   :  { %v847_v62 = vadd.f32 %v2007_v27, %v846_v35  ;;  %v1524_v63 = vpop.f32.mrb[7].mxu0 }
 0xc91   :  { %858 = vrot.lane.b32.xlu1 %v847_v62, %s1829_s4  ;;  %v850_v0 = vadd.f32 %v847_v62, %v2018_v33 }
 0xc93   :  { %v1383_v1 = vmul.f32 -1.442695, %v850_v0 }
 0xc95   :  { %1677 = vpow2.f32 %v1383_v1 }
 0xc9f   :  { %v1678_v2 = vpop.eup %1677 }
 0xca0   :  { %v854_v3 = vadd.f32 1.0, %v1678_v2 }
 0xca2   :  { %1679 = vrcp.f32 %v854_v3 }
 0xcac   :  { %v1680_v4 = vpop.eup %1679 }
 0xcad   :  { %v868_v13 = vsub.f32 1.0, %v1680_v4  ;;  %v875_v17 = vmul.f32 %v1680_v4, %v775_v60 }
 0xd03   :  { %v859_v5 = vpop.permute.xlu1 %858 }
 0xd04   :  { %v861_v6 = vmul.f32 %v1680_v4, %v859_v5 }
 0xd06   :  { %863 = vrot.lane.b32.xlu0 %v861_v6, %s1829_s4 }
 0xd78   :  { %v864_v7 = vpop.permute.xlu0 %863 }
 0xd79   :  { %v866_v10 = vadd.f32 %v864_v7, %v2018_v33 }
 0xd7b   :  { %1681 = vtanh.f32 %v866_v10 }
 0xd85   :  { %v1682_v12 = vpop.eup %1681 }
 0xd86   :  { %870 = vrot.lane.b32.xlu1 %v1682_v12, %s1830_s7 }
 0xdf8   :  { %v871_v16 = vpop.permute.xlu1 %870 }
 0xdf9   :  { %v873_v18 = vmul.f32 %v871_v16, %v868_v13 }
 0xdfb   :  { %v876_v19 = vadd.f32 %v875_v17, %v873_v18 }
 0xdfd   :  { %878 = vrot.lane.b32.xlu0 %v876_v19, %s1830_s7  ;;  %v991_v32 = vrot.slane %v876_v19, 6 }
 0xe6f   :  { %v879_v20 = vpop.permute.xlu0 %878 }
 0xe70   :  { %881 = vst.msk [vmem:[#allocation10 + $0x8] sm:$0x3] %vm399_vm6, %v879_v20  ;;  %1534 = vmatmul.mubr.msk.f32.vlgmr.msra.gmra.mrb[6].mxu1 %vm199_vm5, %v879_v20 }
 0xe71   :  { %1627 = vmatpush3.bf16.msra.mxu1 %v1974_v9  ;;  %1555 = vmatprep.mubr.msk.f32.mxu1 %vm1827_vm4, %v1828_v15 }
 0xe72   :  { %1628 = vmatprep.subr.bf16.mxu1 %v1826_v11 }
 0xe75   :  { %1630 = vmatpush3.bf16.msra.mxu1 %v1979_v14 }
 0xf43   :  { %v961_v21 = vpop.f32.mrb[6].mxu1 }
 0xf44   :  { %v962_v22 = vadd.f32 %v2007_v27, %v961_v21  ;;  %v1535_v23 = vpop.f32.mrb[7].mxu1 }
 0xf46   :  { %v966_v24 = vrot.slane %v962_v22, 6  ;;  %v1246_v22 = vld [vmem:[%s2189_s8 + $0x10] sm:$0xff] }
 0xf48   :  { %975 = vrot.lane.b32.xlu1 %v966_v24, %s1829_s4  ;;  %v968_v25 = vadd.f32 %v966_v24, %v2018_v33 }
 0xf4a   :  { %v1386_v26 = vmul.f32 -1.442695, %v968_v25 }
 0xf4c   :  { %1683 = vpow2.f32 %v1386_v26 }
 0xf56   :  { %v1684_v28 = vpop.eup %1683 }
 0xf57   :  { %v972_v9 = vadd.f32 1.0, %v1684_v28 }
 0xf59   :  { %1685 = vrcp.f32 %v972_v9 }
 0xf63   :  { %v1686_v29 = vpop.eup %1685 }
 0xf64   :  { %v985_v34 = vsub.f32 1.0, %v1686_v29  ;;  %v993_v39 = vmul.f32 %v1686_v29, %v991_v32 }
 0xfba   :  { %v976_v15 = vpop.permute.xlu1 %975 }
 0xfbb   :  { %v978_v30 = vmul.f32 %v1686_v29, %v976_v15 }
 0xfbd   :  { %980 = vrot.lane.b32.xlu0 %v978_v30, %s1829_s4 }
0x102f   :  { %v981_v11 = vpop.permute.xlu0 %980 }
0x1030   :  { %v983_v14 = vadd.f32 %v981_v11, %v2018_v33 }
0x1032   :  { %1687 = vtanh.f32 %v983_v14 }
0x103c   :  { %v1688_v31 = vpop.eup %1687 }
0x103d   :  { %987 = vrot.lane.b32.xlu1 %v1688_v31, %s1830_s7 }
0x10af   :  { %v988_v36 = vpop.permute.xlu1 %987 }
0x10b0   :  { %v990_v38 = vmul.f32 %v988_v36, %v985_v34 }
0x10b2   :  { %v2107_v40 = vadd.f32 %v993_v39, %v990_v38 }
0x10b4   :  { %v1011_v41 = vrot.slane %v2107_v40, 2  ;;  %v1112_v58 = vrot.slane %v2107_v40, 6 }
0x10b6   :  { %1012 = vrot.lane.b32.xlu0 %v1011_v41, %s1830_s7 }
0x1128   :  { %v1013_v42 = vpop.permute.xlu0 %1012 }
0x1129   :  { %1545 = vmatmul.mubr.msk.f32.vlgmr.msra.gmra.mrb[8].mxu0 %vm199_vm5, %v1013_v42 }
0x11fc   :  { %v1082_v43 = vpop.f32.mrb[8].mxu0 }
0x11fd   :  { %v1083_v44 = vadd.f32 %v2007_v27, %v1082_v43  ;;  %v1546_v45 = vpop.f32.mrb[9].mxu0 }
0x11ff   :  { %v1087_v46 = vrot.slane %v1083_v44, 4 }
0x1201   :  { %1096 = vrot.lane.b32.xlu1 %v1087_v46, %s1829_s4  ;;  %v1089_v47 = vadd.f32 %v1087_v46, %v2018_v33 }
0x1203   :  { %v1389_v48 = vmul.f32 -1.442695, %v1089_v47 }
0x1205   :  { %1689 = vpow2.f32 %v1389_v48 }
0x120f   :  { %v1690_v49 = vpop.eup %1689 }
0x1210   :  { %v1093_v50 = vadd.f32 1.0, %v1690_v49 }
0x1212   :  { %1691 = vrcp.f32 %v1093_v50 }
0x121c   :  { %v1692_v51 = vpop.eup %1691 }
0x121d   :  { %v1106_v57 = vsub.f32 1.0, %v1692_v51  ;;  %v1114_v61 = vmul.f32 %v1692_v51, %v1112_v58 }
0x1273   :  { %v1097_v52 = vpop.permute.xlu1 %1096 }
0x1274   :  { %v1099_v53 = vmul.f32 %v1692_v51, %v1097_v52 }
0x1276   :  { %1101 = vrot.lane.b32.xlu0 %v1099_v53, %s1829_s4 }
0x12e8   :  { %v1102_v54 = vpop.permute.xlu0 %1101 }
0x12e9   :  { %v1104_v55 = vadd.f32 %v1102_v54, %v2018_v33 }
0x12eb   :  { %1693 = vtanh.f32 %v1104_v55 }
0x12f5   :  { %v1694_v56 = vpop.eup %1693 }
0x12f6   :  { %1108 = vrot.lane.b32.xlu1 %v1694_v56, %s1830_s7 }
0x1368   :  { %v1109_v60 = vpop.permute.xlu1 %1108 }
0x1369   :  { %v1111_v35 = vmul.f32 %v1109_v60, %v1106_v57 }
0x136b   :  { %v1115_v62 = vadd.f32 %v1114_v61, %v1111_v35 }
0x136d   :  { %v1132_v63 = vrot.slane %v1115_v62, 4  ;;  %v1233_v25 = vrot.slane %v1115_v62, 6 }
0x136f   :  { %1133 = vrot.lane.b32.xlu0 %v1132_v63, %s1830_s7 }
0x13e1   :  { %v1134_v0 = vpop.permute.xlu0 %1133 }
0x13e2   :  { %1556 = vmatmul.mubr.msk.f32.vlgmr.msra.gmra.mrb[8].mxu1 %vm199_vm5, %v1134_v0 }
0x14b5   :  { %v1203_v1 = vpop.f32.mrb[8].mxu1 }
0x14b6   :  { %v1204_v2 = vadd.f32 %v2007_v27, %v1203_v1  ;;  %v1557_v3 = vpop.f32.mrb[9].mxu1 }
0x14b8   :  { %v1208_v4 = vrot.slane %v1204_v2, 2 }
0x14ba   :  { %1217 = vrot.lane.b32.xlu1 %v1208_v4, %s1829_s4  ;;  %v1210_v5 = vadd.f32 %v1208_v4, %v2018_v33 }
0x14bc   :  { %v1392_v6 = vmul.f32 -1.442695, %v1210_v5 }
0x14be   :  { %1695 = vpow2.f32 %v1392_v6 }
0x14c8   :  { %v1696_v7 = vpop.eup %1695 }
0x14c9   :  { %v1214_v10 = vadd.f32 1.0, %v1696_v7 }
0x14cb   :  { %1697 = vrcp.f32 %v1214_v10 }
0x14d5   :  { %v1698_v12 = vpop.eup %1697 }
0x14d6   :  { %v1227_v24 = vsub.f32 1.0, %v1698_v12  ;;  %v1235_v28 = vmul.f32 %v1698_v12, %v1233_v25 }
0x152c   :  { %v1218_v13 = vpop.permute.xlu1 %1217 }
0x152d   :  { %v1220_v16 = vmul.f32 %v1698_v12, %v1218_v13 }
0x152f   :  { %1222 = vrot.lane.b32.xlu0 %v1220_v16, %s1829_s4 }
0x1533   :  { %515 = vrot.lane.b32.xlu0 %v2041_v8, %s1830_s7 }
0x1537   :  { %759 = vrot.lane.b32.xlu0 %v2077_v59, %s1830_s7  ;;  %v1245_v59 = vld [vmem:[%s2189_s8 + $0x8] sm:$0xff] }
0x153b   :  { %1117 = vrot.lane.b32.xlu0 %v1115_v62, %s1830_s7 }
0x15a1   :  { %v1223_v27 = vpop.permute.xlu0 %1222 }
0x15a2   :  { %v1225_v17 = vadd.f32 %v1223_v27, %v2018_v33  ;;  %v1244_v33 = vld [vmem:[%s2189_s8] sm:$0xff] }
0x15a3   :  { %v1631_v21 = vpack.c.bf16 %v1245_v59, %v1244_v33 }
0x15a4   :  { %1699 = vtanh.f32 %v1225_v17 }
0x15a5   :  { %v516_v18 = vpop.permute.xlu0 %515  ;;  %1632 = vmatprep.subr.bf16.mxu0 %v1631_v21 }
0x15a6   :  { %519 = vst.msk [vmem:[#allocation10] sm:$0xc] %vm518_vm7, %v516_v18  ;;  %1634 = vmatpush3.bf16.msra.mxu0 %v1631_v21 }
0x15a9   :  { %v760_v19 = vpop.permute.xlu0 %759 }
0x15aa   :  { %763 = vst.msk [vmem:[#allocation10] sm:$0xc0] %vm762_vm8, %v760_v19 }
0x15ad   :  { %v1118_v20 = vpop.permute.xlu0 %1117 }
0x15ae   :  { %v1700_v8 = vpop.eup %1699  ;;  %1120 = vst.msk [vmem:[#allocation10 + $0x8] sm:$0x30] %vm640_vm9, %v1118_v20 }
0x15af   :  { %1229 = vrot.lane.b32.xlu1 %v1700_v8, %s1830_s7 }
0x15b3   :  { %637 = vrot.lane.b32.xlu1 %v2059_v37, %s1830_s7  ;;  %v1247_v37 = vld [vmem:[%s2189_s8 + $0x18] sm:$0xff]  ;;  %s1832_s8 = smov [#allocation10]  }
0x15b4   :  { %v1635_v23 = vpack.c.bf16 %v1247_v37, %v1246_v22  ;;  %s1346_s6 = sshll.u32 %s1832_s8, 4  ;;  %s1347_s6 = int_to_ptr.vmem [resolvable:$true] %s1346_s6 }
0x15b5   :  { %s1789_s28 = scalar_lea.vmem %s1347_s6, 256  ;;  %p1794_p5 = scmp.lt.s32.totalorder %s1347_s6, %s1347_s6 }
0x15b6   :  { %1636 = vmatprep.subr.bf16.mxu0 %v1635_v23  ;;  %p1790_p4 = scmp.ne.s32.totalorder %s1347_s6, %s1789_s28  ;;  %p1795_p6 = scmp.lt.s32.totalorder %s1789_s28, %s1789_s28 }
0x15b7   :  { %996 = vrot.lane.b32.xlu1 %v2107_v40, %s1830_s7  ;;  %1638 = vmatpush3.bf16.msra.mxu0 %v1635_v23 }
0x15b8   :  { %p1796_p7 = por %p1795_p6, %p1794_p5 }
0x15ba   :  { %p1797_p8 = pnand %p1796_p7, %p1790_p4 }
0x1621   :  { %v1230_v26 = vpop.permute.xlu1 %1229 }
0x1622   :  { %v1232_v9 = vmul.f32 %v1230_v26, %v1227_v24 }
0x1624   :  { %v1236_v29 = vadd.f32 %v1235_v28, %v1232_v9 }
0x1625   :  { %v638_v15 = vpop.permute.xlu1 %637 }
0x1626   :  { %641 = vst.msk [vmem:[#allocation10] sm:$0x30] %vm640_vm9, %v638_v15  ;;  %1238 = vrot.lane.b32.xlu1 %v1236_v29, %s1830_s7 }
0x1629   :  { %v997_v30 = vpop.permute.xlu1 %996 }
0x162a   :  { %999 = vst.msk [vmem:[#allocation10 + $0x8] sm:$0xc] %vm518_vm7, %v997_v30 }
0x162d   :  { %v1242_v11 = vld [vmem:[#allocation10] sm:$0xff] }
0x162e   :  { %1566 = vmatprep.mubr.msk.f32.mxu0 %vm199_vm5, %v1242_v11 }
0x1698   :  { %v1239_v14 = vpop.permute.xlu1 %1238 }
0x1699   :  { %1241 = vst.msk [vmem:[#allocation10 + $0x8] sm:$0xc0] %vm762_vm8, %v1239_v14 }
0x16a0   :  { %v1243_v31 = vld [vmem:[#allocation10 + $0x8] sm:$0xff] }
0x16a1   :  { %1567 = vmatmul.mubr.msk.f32.vlgmr.msra.gmra.mrb[10].mxu0 %vm199_vm5, %v1243_v31 }
0x16a2   :  { %1800 = shalt.err (!%p1797_p8)
}
0x16a3   :  { %s1801_s16 = scalar_lea.hbm %s2192_s11, 256 }
0x16a4   :  { %p1802_p9 = scmp.ne.s32.totalorder %s2192_s11, %s1801_s16  ;;  %p1805_p10 = scmp.lt.u32.totalorder %s1801_s16, %s2192_s11 }
0x16a6   :  { %p1807_p11 = pnand %p1805_p10, %p1802_p9 }
0x16a8   :  { %1810 = shalt.err (!%p1807_p11)
}
0x16a9   :  { %1352 = dma.vmem_to_hbm [thread:$0]  %s1347_s6, 256, %s2192_s11, [#allocation4], %s1821_s3, %s1821_s3, %s1822_s18   ;;  %vm1336_vm10 = vcmask 64512  }
0x16aa   :  { %v1393_v32 = vld [vmem:[%s2190_s9] ss:$0 sm:$0xff] }
0x1774   :  { %v1568_v34 = vpop.f32.mrb[10].mxu0 }
0x1775   :  { %v1333_v36 = vadd.f32 %v1568_v34, %v1393_v32  ;;  %v1327_v38 = vpop.f32.mrb[11].mxu0 }
0x1776   :  { %v1328_v39 = vadd.f32 %v1393_v32, %v1327_v38 }
0x1777   :  { %1338 = vst.msk [vmem:[%s2191_s10 + $0x8] sm:$0xff] %vm1336_vm10, %v1333_v36 }
0x1778   :  { %1337 = vst.msk [vmem:[%s2191_s10] sm:$0xff] %vm1336_vm10, %v1328_v39 }
0x1779   :  { %1817 = dma.done.wait [#allocation4], 256  }
0x177a   :  { %1818 = vsyncadd [#allocation4], 4294967040 }
0x177b   :  { %1358 = vsyncpa [#allocation3], 1 }
0x177c   :  { %1359 = vsyncpa [#allocation6], 1 }
0x177d   :  { %1360 = vsyncpa [#allocation9], 1 }
0x177e   :  { %1361 = vsyncpa [#allocation4], 1 }

</bundles_post_ra>
